<compile_context>
chip_gen: v6e
topology: v6e:2x2x1
jax: 0.10.0
libtpu: 0.0.40
codegen_flags: <defaults>
</compile_context>

<pallas_src>
import jax
import jax.numpy as jnp
from jax.experimental import pallas as pl
from jax.experimental.pallas import tpu as pltpu


def _round_up(n, m):
    return (n + m - 1) // m * m


def dis_fused_kernel(x_ref, w12_ref, b12_ref, w3_ref, b3_ref, o_ref):
    # fused fc1.fc2: (TB, K) @ (K, H) -> f32 accum, bias, ReLU
    h = jnp.dot(x_ref[...], w12_ref[...], preferred_element_type=jnp.float32)
    h = jnp.maximum(h + b12_ref[...], 0.0)
    # fc3: (TB, H) @ (H, O) -> f32 accum, bias
    y = jnp.dot(h.astype(w3_ref.dtype), w3_ref[...],
                preferred_element_type=jnp.float32)
    o_ref[...] = (y + b3_ref[...]).astype(o_ref.dtype)


def prepare_params(params, in_channel, out_channel, weight_dtype=jnp.bfloat16):
    """One-time offline prep: fold fc1*fc2, zero-pad lanes to 128, cast to bf16."""
    w1, b1 = params["w1"], params["b1"]       # (in, 400), (400,)
    w2, b2 = params["w2"], params["b2"]       # (400, 100), (100,)
    w3, b3 = params["w3"], params["b3"]       # (100, out), (out,)

    # No activation between fc1 and fc2 -> algebraically fold (f32 math).
    w12 = w1 @ w2                             # (in, 100)
    b12 = b1 @ w2 + b2                        # (100,)

    K_pad = _round_up(in_channel, 128)        # 1200 -> 1280
    H_pad = _round_up(w12.shape[1], 128)      # 100  -> 128
    O_pad = _round_up(out_channel, 128)       # 2    -> 128

    w12_p = jnp.zeros((K_pad, H_pad), jnp.float32).at[:in_channel, :w12.shape[1]].set(w12)
    b12_p = jnp.zeros((1, H_pad), jnp.float32).at[:, :b12.shape[0]].set(b12)
    w3_p = jnp.zeros((H_pad, O_pad), jnp.float32).at[:w3.shape[0], :out_channel].set(w3)
    b3_p = jnp.zeros((1, O_pad), jnp.float32).at[:, :out_channel].set(b3)

    return {
        "w12": w12_p.astype(weight_dtype),
        "b12": b12_p,                          # biases stay f32 (added to f32 accum)
        "w3": w3_p.astype(weight_dtype),
        "b3": b3_p,
        "K_pad": K_pad, "H_pad": H_pad, "O_pad": O_pad,
        "out_channel": out_channel,
    }


def dis_forward(x, prep, *, x_dtype=jnp.bfloat16):
    """Forward pass of Dis.  x: (B, in_channel) f32; prep: output of prepare_params."""
    B, in_channel = x.shape
    K_pad, H_pad, O_pad = prep["K_pad"], prep["H_pad"], prep["O_pad"]
    out_channel = prep["out_channel"]

    # Batch tiling: small B -> single tile (rounded to sublane multiple);
    # large B -> 256-row tiles so x/out DMAs pipeline while weights stay resident.
    if B <= 512:
        B_pad = _round_up(B, 8)
        TB = B_pad
    else:
        TB = 256
        B_pad = _round_up(B, TB)

    x_p = jnp.zeros((B_pad, K_pad), x_dtype).at[:B, :in_channel].set(x.astype(x_dtype))

    grid_spec = pltpu.PrefetchScalarGridSpec(
        num_scalar_prefetch=0,
        grid=(B_pad // TB,),
        in_specs=[
            pl.BlockSpec((TB, K_pad), lambda i: (i, 0)),      # x: tiled over batch
            pl.BlockSpec((K_pad, H_pad), lambda i: (0, 0)),   # fused W12: VMEM-resident
            pl.BlockSpec((1, H_pad), lambda i: (0, 0)),       # b12
            pl.BlockSpec((H_pad, O_pad), lambda i: (0, 0)),   # W3: VMEM-resident
            pl.BlockSpec((1, O_pad), lambda i: (0, 0)),       # b3
        ],
        out_specs=pl.BlockSpec((TB, O_pad), lambda i: (i, 0)),
    )

    bytes_accessed = (
        x_p.size * x_p.dtype.itemsize
        + prep["w12"].size * prep["w12"].dtype.itemsize
        + prep["b12"].size * 4
        + prep["w3"].size * prep["w3"].dtype.itemsize
        + prep["b3"].size * 4
        + B_pad * O_pad * 4
    )
    cost = pl.CostEstimate(
        flops=2 * B_pad * K_pad * H_pad + 2 * B_pad * H_pad * O_pad,
        transcendentals=0,
        bytes_accessed=bytes_accessed,
    )

    out = pl.pallas_call(
        dis_fused_kernel,
        out_shape=jax.ShapeDtypeStruct((B_pad, O_pad), jnp.float32),
        grid_spec=grid_spec,
        compiler_params=pltpu.CompilerParams(
            dimension_semantics=("parallel",),   # megacore sharding on v7x; no-op on v5e/v6e
        ),
        cost_estimate=cost,
    )(x_p, prep["w12"], prep["b12"], prep["w3"], prep["b3"])

    return out[:B, :out_channel]


def init_params(key, in_channel=1200, out_channel=2):
    """Deterministic parameter init (shapes match the PyTorch module, stored (in, out))."""
    k1, k2, k3, k4, k5, k6 = jax.random.split(key, 6)

    def linear(kw, kb, fan_in, fan_out):
        bound = 1.0 / jnp.sqrt(fan_in)
        w = jax.random.uniform(kw, (fan_in, fan_out), jnp.float32, -bound, bound)
        b = jax.random.uniform(kb, (fan_out,), jnp.float32, -bound, bound)
        return w, b

    w1, b1 = linear(k1, k2, in_channel, 400)
    w2, b2 = linear(k3, k4, 400, 100)
    w3, b3 = linear(k5, k6, 100, out_channel)
    return {"w1": w1, "b1": b1, "w2": w2, "b2": b2, "w3": w3, "b3": b3}


def dis_reference(x, p):
    """Original 3-layer f32 forward (semantic reference)."""
    h1 = x @ p["w1"] + p["b1"]
    h2 = jnp.maximum(h1 @ p["w2"] + p["b2"], 0.0)
    return h2 @ p["w3"] + p["b3"]


if __name__ == "__main__":
    key = jax.random.PRNGKey(0)
    kx, kp = jax.random.split(key)

    B, IN_CH, OUT_CH = 8, 1200, 2
    x = jax.random.normal(kx, (B, IN_CH), jnp.float32)
    params = init_params(kp, IN_CH, OUT_CH)

    prep = prepare_params(params, IN_CH, OUT_CH)
    out = jax.block_until_ready(dis_forward(x, prep))
    assert out.shape == (B, OUT_CH)

    # Check 1 (kernel exactness): same fused bf16 weights computed with plain XLA ops.
    xb = x.astype(jnp.bfloat16).astype(jnp.float32)
    w12f = prep["w12"][:IN_CH, :].astype(jnp.float32)
    w3f = prep["w3"].astype(jnp.float32)
    h = jnp.maximum(xb @ w12f + prep["b12"][0], 0.0)
    ref_matched = (h @ w3f + prep["b3"][0])[:, :OUT_CH]
    assert jnp.allclose(out, ref_matched, atol=1e-3, rtol=1e-3), (
        float(jnp.max(jnp.abs(out - ref_matched))))

    # Check 2 (module semantics): original f32 3-layer MLP; tolerance reflects bf16 weights.
    ref = dis_reference(x, params)
    assert jnp.allclose(out, ref, atol=2e-2, rtol=2e-2), (
        float(jnp.max(jnp.abs(out - ref))))

    print("KERNEL_OK")
</pallas_src>

<mosaic_0001>
module attributes {stable_mosaic.version = 11 : i64} {
  func.func @dis_fused_kernel(%arg0: i32, %arg1: memref<8x1280xbf16, #tpu.memory_space<vmem>>, %arg2: memref<1280x128xbf16, #tpu.memory_space<vmem>>, %arg3: memref<1x128xf32, #tpu.memory_space<vmem>>, %arg4: memref<128x128xbf16, #tpu.memory_space<vmem>>, %arg5: memref<1x128xf32, #tpu.memory_space<vmem>>, %arg6: memref<8x128xf32, #tpu.memory_space<vmem>>) attributes {dimension_semantics = [#tpu.dimension_semantics<parallel>], iteration_bounds = array<i64: 1>, scalar_prefetch = 0 : i64, scratch_operands = 0 : i64, tpu.core_type = #tpu.core_type<tc>, window_params = [{transform_indices = @transform_0, window_bounds = array<i64: 8, 1280>}, {pipeline_mode = #tpu.pipeline_mode<synchronous>, transform_indices = @transform_1, window_bounds = array<i64: 1280, 128>}, {pipeline_mode = #tpu.pipeline_mode<synchronous>, transform_indices = @transform_2, window_bounds = array<i64: 1, 128>}, {pipeline_mode = #tpu.pipeline_mode<synchronous>, transform_indices = @transform_3, window_bounds = array<i64: 128, 128>}, {pipeline_mode = #tpu.pipeline_mode<synchronous>, transform_indices = @transform_4, window_bounds = array<i64: 1, 128>}, {transform_indices = @transform_5, window_bounds = array<i64: 8, 128>}]} {
    %c0 = arith.constant 0 : index
    %c0_0 = arith.constant 0 : index
    %0 = vector.load %arg1[%c0, %c0_0] : memref<8x1280xbf16, #tpu.memory_space<vmem>>, vector<8x1280xbf16>
    %c0_1 = arith.constant 0 : index
    %c0_2 = arith.constant 0 : index
    %1 = vector.load %arg2[%c0_1, %c0_2] : memref<1280x128xbf16, #tpu.memory_space<vmem>>, vector<1280x128xbf16>
    %cst = arith.constant dense<0.000000e+00> : vector<8x128xf32>
    %2 = tpu.matmul %0, %1, %cst {dimension_numbers = #tpu.dot_dimension_numbers<[1], [0], [0], [1], [0, 0, 1, 1], [], []>} : vector<8x1280xbf16>, vector<1280x128xbf16>, vector<8x128xf32> -> vector<8x128xf32>
    %c0_3 = arith.constant 0 : index
    %c0_4 = arith.constant 0 : index
    %3 = vector.load %arg3[%c0_3, %c0_4] : memref<1x128xf32, #tpu.memory_space<vmem>>, vector<1x128xf32>
    %4 = vector.broadcast %3 : vector<1x128xf32> to vector<8x128xf32>
    %5 = arith.addf %2, %4 : vector<8x128xf32>
    %cst_5 = arith.constant 0.000000e+00 : f32
    %6 = vector.broadcast %cst_5 : f32 to vector<8x128xf32>
    %7 = arith.maximumf %5, %6 : vector<8x128xf32>
    %8 = arith.truncf %7 : vector<8x128xf32> to vector<8x128xbf16>
    %c0_6 = arith.constant 0 : index
    %c0_7 = arith.constant 0 : index
    %9 = vector.load %arg4[%c0_6, %c0_7] : memref<128x128xbf16, #tpu.memory_space<vmem>>, vector<128x128xbf16>
    %cst_8 = arith.constant dense<0.000000e+00> : vector<8x128xf32>
    %10 = tpu.matmul %8, %9, %cst_8 {dimension_numbers = #tpu.dot_dimension_numbers<[1], [0], [0], [1], [0, 0, 1, 1], [], []>} : vector<8x128xbf16>, vector<128x128xbf16>, vector<8x128xf32> -> vector<8x128xf32>
    %c0_9 = arith.constant 0 : index
    %c0_10 = arith.constant 0 : index
    %11 = vector.load %arg5[%c0_9, %c0_10] : memref<1x128xf32, #tpu.memory_space<vmem>>, vector<1x128xf32>
    %12 = vector.broadcast %11 : vector<1x128xf32> to vector<8x128xf32>
    %13 = arith.addf %10, %12 : vector<8x128xf32>
    %c0_11 = arith.constant 0 : index
    %c0_12 = arith.constant 0 : index
    %14 = vector.load %arg6[%c0_11, %c0_12] : memref<8x128xf32, #tpu.memory_space<vmem>>, vector<8x128xf32>
    tpu.vector_store %arg6[%c0_11, %c0_12], %13 {strides = array<i32>} : memref<8x128xf32, #tpu.memory_space<vmem>>, vector<8x128xf32>,
    return
  }
  func.func @transform_0(%arg0: i32) -> (i32, i32) {
    %c0_i32 = arith.constant 0 : i32
    %c0_i32_0 = arith.constant 0 : i32
    return %arg0, %c0_i32 : i32, i32
  }
  func.func @transform_1(%arg0: i32) -> (i32, i32) {
    %c0_i32 = arith.constant 0 : i32
    %c0_i32_0 = arith.constant 0 : i32
    %c0_i32_1 = arith.constant 0 : i32
    return %c0_i32, %c0_i32_0 : i32, i32
  }
  func.func @transform_2(%arg0: i32) -> (i32, i32) {
    %c0_i32 = arith.constant 0 : i32
    %c0_i32_0 = arith.constant 0 : i32
    %c0_i32_1 = arith.constant 0 : i32
    return %c0_i32, %c0_i32_0 : i32, i32
  }
  func.func @transform_3(%arg0: i32) -> (i32, i32) {
    %c0_i32 = arith.constant 0 : i32
    %c0_i32_0 = arith.constant 0 : i32
    %c0_i32_1 = arith.constant 0 : i32
    return %c0_i32, %c0_i32_0 : i32, i32
  }
  func.func @transform_4(%arg0: i32) -> (i32, i32) {
    %c0_i32 = arith.constant 0 : i32
    %c0_i32_0 = arith.constant 0 : i32
    %c0_i32_1 = arith.constant 0 : i32
    return %c0_i32, %c0_i32_0 : i32, i32
  }
  func.func @transform_5(%arg0: i32) -> (i32, i32) {
    %c0_i32 = arith.constant 0 : i32
    %c0_i32_0 = arith.constant 0 : i32
    return %arg0, %c0_i32 : i32, i32
  }
}

</mosaic_0001>

<bundles_post_ra>
// kernel: tpu_custom_call.1
= control target key start
LH: loop header
LB: loop body
LE: loop exit
PB: predicated region body
PF: predicated region fallthrough
CT: control target
= control target key end

     0   :  { %10 = vsyncpa [#allocation3], 0  ;;  %s1565_s0 = inlined_call_operand.hbm [shape: bf16[8,1280], index: 0, kind: input, shape index: {}]   ;;  %s1566_s1 = inlined_call_operand.hbm [shape: bf16[1280,128], index: 1, kind: input, shape index: {}]   ;;  %s1567_s2 = inlined_call_operand.vmem [shape: f32[1,128], index: 2, kind: input, shape index: {}]   ;;  %s1568_s3 = inlined_call_operand.hbm [shape: bf16[128,128], index: 3, kind: input, shape index: {}]   ;;  %s1569_s4 = inlined_call_operand.vmem [shape: f32[1,128], index: 4, kind: input, shape index: {}]   ;;  %s1570_s5 = inlined_call_operand.hbm [shape: f32[8,128], index: 5, kind: output, shape index: {}]  }
   0x1   :  { %11 = vsyncpa [#allocation6], 0 }
   0x2   :  { %12 = vsyncpa [#allocation4], 0  ;;  %s1509_s18 = smov [#allocation5]  }
   0x3   :  { %s28_s19 = sshll.u32 %s1509_s18, 4  ;;  %s29_s19 = int_to_ptr.vmem [resolvable:$true] %s28_s19 }
   0x4   :  { %s1431_s20 = scalar_lea.vmem %s29_s19, 10240  ;;  %p1436_p1 = scmp.lt.s32.totalorder %s29_s19, %s29_s19 }
   0x5   :  { %p1432_p0 = scmp.ne.s32.totalorder %s29_s19, %s1431_s20  ;;  %p1437_p2 = scmp.lt.s32.totalorder %s1431_s20, %s1431_s20 }
   0x7   :  { %p1438_p3 = por %p1437_p2, %p1436_p1 }
   0x9   :  { %p1439_p4 = pnand %p1438_p3, %p1432_p0 }
   0xb   :  { %1442 = shalt.err (!%p1439_p4)
}
   0xc   :  { %s1510_s21 = smov 64   ;;  %s1511_s22 = smov 4  }
   0xd   :  { %34 = dma.hbm_to_vmem [thread:$0]  %s1566_s1, 10240, %s29_s19, [#allocation6], %s1510_s21, %s1510_s21, %s1511_s22  }
   0xe   :  { %s1512_s25 = smov [#allocation2]   ;;  %s1513_s27 = smov [#allocation7]  }
   0xf   :  { %s19_s26 = sshll.u32 %s1512_s25, 4  ;;  %s42_s28 = sshll.u32 %s1513_s27, 4  ;;  %s20_s26 = int_to_ptr.vmem [resolvable:$true] %s19_s26  ;;  %s43_s28 = int_to_ptr.vmem [resolvable:$true] %s42_s28 }
  0x10   :  { %s1451_s29 = scalar_lea.vmem %s20_s26, 640  ;;  %p1456_p6 = scmp.lt.s32.totalorder %s20_s26, %s20_s26 }
  0x11   :  { %p1452_p5 = scmp.ne.s32.totalorder %s20_s26, %s1451_s29  ;;  %p1457_p7 = scmp.lt.s32.totalorder %s1451_s29, %s1451_s29 }
  0x13   :  { %p1458_p8 = por %p1457_p7, %p1456_p6 }
  0x15   :  { %p1459_p9 = pnand %p1458_p8, %p1452_p5 }
  0x17   :  { %1462 = shalt.err (!%p1459_p9)
}
  0x18   :  { %22 = dma.hbm_to_vmem [thread:$0]  %s1565_s0, 640, %s20_s26, [#allocation3]  }
  0x19   :  { %s1471_s7 = scalar_lea.vmem %s43_s28, 1024  ;;  %p1476_p11 = scmp.lt.s32.totalorder %s43_s28, %s43_s28 }
  0x1a   :  { %p1472_p10 = scmp.ne.s32.totalorder %s43_s28, %s1471_s7  ;;  %p1477_p12 = scmp.lt.s32.totalorder %s1471_s7, %s1471_s7 }
  0x1c   :  { %p1478_p13 = por %p1477_p12, %p1476_p11 }
  0x1e   :  { %p1479_p0 = pnand %p1478_p13, %p1472_p10 }
  0x20   :  { %1482 = shalt.err (!%p1479_p0)
}
  0x21   :  { %48 = dma.hbm_to_vmem [thread:$0]  %s1568_s3, 1024, %s43_s28, [#allocation6], %s1510_s21, %s1510_s21, %s1511_s22  }
  0x22   :  { %1503 = dma.done.wait [#allocation3], 640  }
  0x23   :  { %1504 = vsyncadd [#allocation3], 4294966656 }
  0x24   :  { %1505 = dma.done.wait [#allocation6], 11264  }
  0x25   :  { %1506 = vsyncadd [#allocation6], 4294956032  ;;  %v1325_v0 = vld [vmem:[#allocation5 + $0x78] sm:$0xff]   ;;  %v1329_v4 = vld [vmem:[#allocation5 + $0x70] sm:$0xff]   ;;  %vm1515_vm0 = vmmov 0  }
  0x26   :  { %v1326_v1 = vld [vmem:[#allocation5 + $0x38] sm:$0xff]   ;;  %1178 = vmatprep.subr.bf16.mxu0 %v1325_v0  ;;  %v1330_v5 = vld [vmem:[#allocation5 + $0x30] sm:$0xff]   ;;  %v1333_v8 = vld [vmem:[#allocation5 + $0x68] sm:$0xff]  }
  0x27   :  { %v1327_v2 = vld [vmem:[#allocation5 + $0xf8] sm:$0xff]   ;;  %1179 = vmatpush3.bf16.msra.mxu0 %v1326_v1  ;;  %v1331_v6 = vld [vmem:[#allocation5 + $0xf0] sm:$0xff]   ;;  %v1334_v9 = vld [vmem:[#allocation5 + $0x28] sm:$0xff]  }
  0x28   :  { %v1328_v3 = vld [vmem:[#allocation5 + $0xb8] sm:$0xff]   ;;  %1200 = vmatprep.subr.bf16.mxu1 %v1327_v2  ;;  %1180 = vmatprep.subr.bf16.mxu0 %v1329_v4  ;;  %v1332_v7 = vld [vmem:[#allocation5 + $0xb0] sm:$0xff]   ;;  %v1335_v10 = vld [vmem:[#allocation5 + $0xe8] sm:$0xff]  }
  0x29   :  { %1201 = vmatpush3.bf16.msra.mxu1 %v1328_v3  ;;  %v1336_v11 = vld [vmem:[#allocation5 + $0xa8] sm:$0xff]   ;;  %v1337_v12 = vld [vmem:[#allocation5 + $0x60] sm:$0xff]   ;;  %v1341_v16 = vld [vmem:[#allocation5 + $0x58] sm:$0xff]  }
  0x2a   :  { %1202 = vmatprep.subr.bf16.mxu1 %v1331_v6  ;;  %v1338_v13 = vld [vmem:[#allocation5 + $0x20] sm:$0xff]   ;;  %v1342_v17 = vld [vmem:[#allocation5 + $0x18] sm:$0xff]   ;;  %v1345_v20 = vld [vmem:[#allocation5 + $0x50] sm:$0xff]  }
  0x2b   :  { %1181 = vmatpush3.bf16.msra.mxu0 %v1330_v5  ;;  %v1339_v14 = vld [vmem:[#allocation5 + $0xe0] sm:$0xff]   ;;  %v1343_v18 = vld [vmem:[#allocation5 + $0xd8] sm:$0xff]   ;;  %v1346_v21 = vld [vmem:[#allocation5 + $0x10] sm:$0xff]  }
  0x2c   :  { %1182 = vmatprep.subr.bf16.mxu0 %v1333_v8  ;;  %v1340_v15 = vld [vmem:[#allocation5 + $0xa0] sm:$0xff]   ;;  %v1344_v19 = vld [vmem:[#allocation5 + $0x98] sm:$0xff]   ;;  %v1347_v22 = vld [vmem:[#allocation5 + $0xd0] sm:$0xff]  }
  0x2d   :  { %1203 = vmatpush3.bf16.msra.mxu1 %v1332_v7  ;;  %v1348_v23 = vld [vmem:[#allocation5 + $0x90] sm:$0xff]   ;;  %v1349_v24 = vld [vmem:[#allocation5 + $0x48] sm:$0xff]   ;;  %v1353_v28 = vld [vmem:[#allocation5 + $0x40] sm:$0xff]  }
  0x2e   :  { %1204 = vmatprep.subr.bf16.mxu1 %v1335_v10  ;;  %v1350_v25 = vld [vmem:[#allocation5 + $0x8] sm:$0xff]   ;;  %v1354_v29 = vld [vmem:[#allocation5] sm:$0xff]   ;;  %v61_v31 = vld [vmem:[#allocation2] sm:$0xff] }
  0x2f   :  { %1183 = vmatpush3.bf16.msra.mxu0 %v1334_v9  ;;  %v1351_v26 = vld [vmem:[#allocation5 + $0xc8] sm:$0xff]   ;;  %v1355_v30 = vld [vmem:[#allocation5 + $0xc0] sm:$0xff]   ;;  %v1079_v32 = vcombine.low %v61_v31, %v61_v31  ;;  %v1080_v33 = vcombine.high %v61_v31, %v61_v31  ;;  %v1359_v35 = vld [vmem:[#allocation5 + $0x178] sm:$0xff]  }
  0x30   :  { %1184 = vmatprep.subr.bf16.mxu0 %v1337_v12  ;;  %v1352_v27 = vld [vmem:[#allocation5 + $0x88] sm:$0xff]   ;;  %v1358_v34 = vld [vmem:[#allocation5 + $0x80] sm:$0xff]   ;;  %v1362_v39 = vld [vmem:[#allocation5 + $0x138] sm:$0xff]  }
  0x31   :  { %1205 = vmatpush3.bf16.msra.mxu1 %v1336_v11  ;;  %v62_v36 = vld [vmem:[#allocation2 + $0x8] sm:$0xff]  ;;  %780 = vmatprep.mubr.bf16.mxu0 %v1080_v33  ;;  %v1363_v40 = vld [vmem:[#allocation5 + $0x1f8] sm:$0xff]   ;;  %v1365_v42 = vld [vmem:[#allocation5 + $0x170] sm:$0xff]  }
  0x32   :  { %1206 = vmatprep.subr.bf16.mxu1 %v1339_v14  ;;  %v1081_v37 = vcombine.low %v62_v36, %v62_v36  ;;  %v1082_v38 = vcombine.high %v62_v36, %v62_v36  ;;  %v1364_v41 = vld [vmem:[#allocation5 + $0x1b8] sm:$0xff]   ;;  %v1366_v43 = vld [vmem:[#allocation5 + $0x130] sm:$0xff]   ;;  %v1369_v46 = vld [vmem:[#allocation5 + $0x168] sm:$0xff]  }
  0x33   :  { %1185 = vmatpush3.bf16.msra.mxu0 %v1338_v13  ;;  %v1367_v44 = vld [vmem:[#allocation5 + $0x1f0] sm:$0xff]   ;;  %v1370_v47 = vld [vmem:[#allocation5 + $0x128] sm:$0xff]   ;;  %v1373_v50 = vld [vmem:[#allocation5 + $0x160] sm:$0xff]  }
  0x34   :  { %1186 = vmatprep.subr.bf16.mxu0 %v1341_v16  ;;  %820 = vmatprep.mubr.bf16.mxu1 %v1082_v38  ;;  %v1368_v45 = vld [vmem:[#allocation5 + $0x1b0] sm:$0xff]   ;;  %v1371_v48 = vld [vmem:[#allocation5 + $0x1e8] sm:$0xff]   ;;  %v1374_v51 = vld [vmem:[#allocation5 + $0x120] sm:$0xff]  }
  0x35   :  { %1207 = vmatpush3.bf16.msra.mxu1 %v1340_v15  ;;  %v1372_v49 = vld [vmem:[#allocation5 + $0x1a8] sm:$0xff]   ;;  %v1375_v52 = vld [vmem:[#allocation5 + $0x1e0] sm:$0xff]   ;;  %v1377_v54 = vld [vmem:[#allocation5 + $0x158] sm:$0xff]  }
  0x36   :  { %1208 = vmatprep.subr.bf16.mxu1 %v1343_v18  ;;  %v1376_v53 = vld [vmem:[#allocation5 + $0x1a0] sm:$0xff]   ;;  %v1378_v55 = vld [vmem:[#allocation5 + $0x118] sm:$0xff]   ;;  %v1381_v58 = vld [vmem:[#allocation5 + $0x150] sm:$0xff]  }
  0x37   :  { %1187 = vmatpush3.bf16.msra.mxu0 %v1342_v17  ;;  %v1379_v56 = vld [vmem:[#allocation5 + $0x1d8] sm:$0xff]   ;;  %v1382_v59 = vld [vmem:[#allocation5 + $0x110] sm:$0xff]   ;;  %v1385_v62 = vld [vmem:[#allocation5 + $0x148] sm:$0xff]  }
  0x38   :  { %1188 = vmatprep.subr.bf16.mxu0 %v1345_v20  ;;  %v1380_v57 = vld [vmem:[#allocation5 + $0x198] sm:$0xff]   ;;  %v1383_v60 = vld [vmem:[#allocation5 + $0x1d0] sm:$0xff]   ;;  %v1386_v63 = vld [vmem:[#allocation5 + $0x108] sm:$0xff]  }
  0x39   :  { %1209 = vmatpush3.bf16.msra.mxu1 %v1344_v19  ;;  %v1384_v61 = vld [vmem:[#allocation5 + $0x190] sm:$0xff]   ;;  %v1387_v0 = vld [vmem:[#allocation5 + $0x1c8] sm:$0xff]   ;;  %v1389_v2 = vld [vmem:[#allocation5 + $0x140] sm:$0xff]  }
  0x3a   :  { %1210 = vmatprep.subr.bf16.mxu1 %v1347_v22  ;;  %v1388_v1 = vld [vmem:[#allocation5 + $0x188] sm:$0xff]   ;;  %v1390_v3 = vld [vmem:[#allocation5 + $0x100] sm:$0xff]   ;;  %v1395_v9 = vld [vmem:[#allocation5 + $0x278] sm:$0xff]  }
  0x3b   :  { %1189 = vmatpush3.bf16.msra.mxu0 %v1346_v21  ;;  %v1391_v4 = vld [vmem:[#allocation5 + $0x1c0] sm:$0xff]   ;;  %v63_v5 = vld [vmem:[#allocation2 + $0x10] sm:$0xff]  ;;  %v64_v10 = vld [vmem:[#allocation2 + $0x18] sm:$0xff] }
  0x3c   :  { %1190 = vmatprep.subr.bf16.mxu0 %v1349_v24  ;;  %v1083_v6 = vcombine.low %v63_v5, %v63_v5  ;;  %v1084_v7 = vcombine.high %v63_v5, %v63_v5  ;;  %v1394_v8 = vld [vmem:[#allocation5 + $0x180] sm:$0xff]   ;;  %v1085_v11 = vcombine.low %v64_v10, %v64_v10  ;;  %v1086_v12 = vcombine.high %v64_v10, %v64_v10  ;;  %v1398_v13 = vld [vmem:[#allocation5 + $0x238] sm:$0xff]   ;;  %v1399_v14 = vld [vmem:[#allocation5 + $0x270] sm:$0xff]  }
  0x3d   :  { %1211 = vmatpush3.bf16.msra.mxu1 %v1348_v23  ;;  %v1400_v15 = vld [vmem:[#allocation5 + $0x230] sm:$0xff]   ;;  %v1401_v16 = vld [vmem:[#allocation5 + $0x268] sm:$0xff]   ;;  %v1403_v18 = vld [vmem:[#allocation5 + $0x260] sm:$0xff]  }
  0x3e   :  { %1212 = vmatprep.subr.bf16.mxu1 %v1351_v26  ;;  %v1402_v17 = vld [vmem:[#allocation5 + $0x228] sm:$0xff]   ;;  %v1404_v19 = vld [vmem:[#allocation5 + $0x220] sm:$0xff]   ;;  %v1405_v20 = vld [vmem:[#allocation5 + $0x258] sm:$0xff]  }
  0x3f   :  { %1191 = vmatpush3.bf16.msra.mxu0 %v1350_v25  ;;  %v1406_v21 = vld [vmem:[#allocation5 + $0x218] sm:$0xff]   ;;  %v1407_v22 = vld [vmem:[#allocation5 + $0x250] sm:$0xff]   ;;  %v1409_v26 = vld [vmem:[#allocation5 + $0x248] sm:$0xff]  }
  0x40   :  { %1192 = vmatprep.subr.bf16.mxu0 %v1353_v28  ;;  %v65_v23 = vld [vmem:[#allocation2 + $0x20] sm:$0xff]  ;;  %v1408_v25 = vld [vmem:[#allocation5 + $0x210] sm:$0xff]   ;;  %v1411_v28 = vld [vmem:[#allocation5 + $0x240] sm:$0xff]  }
  0x41   :  { %1213 = vmatpush3.bf16.msra.mxu1 %v1352_v27  ;;  %v1088_v24 = vcombine.high %v65_v23, %v65_v23  ;;  %v1410_v27 = vld [vmem:[#allocation5 + $0x208] sm:$0xff]   ;;  %v1415_v31 = vld [vmem:[#allocation7 + $0x38] sm:$0xff]   ;;  %v1416_v33 = vld [vmem:[#allocation7 + $0x30] sm:$0xff]  }
  0x42   :  { %1214 = vmatprep.subr.bf16.mxu1 %v1355_v30  ;;  %v1087_v30 = vcombine.low %v65_v23, %v65_v23  ;;  %v1419_v36 = vld [vmem:[#allocation7 + $0x18] sm:$0xff]   ;;  %v1421_v38 = vld [vmem:[#allocation7 + $0x8] sm:$0xff]  }
  0x43   :  { %1193 = vmatpush3.bf16.msra.mxu0 %v1354_v29  ;;  %v1412_v29 = vld [vmem:[#allocation5 + $0x200] sm:$0xff]  }
  0x44   :  { %1222 = vmatprep.subr.bf16.mxu0 %v1359_v35  ;;  %v1418_v35 = vld [vmem:[#allocation7 + $0x20] sm:$0xff]  }
  0x45   :  { %1215 = vmatpush3.bf16.msra.mxu1 %v1358_v34  ;;  %v1417_v34 = vld [vmem:[#allocation7 + $0x28] sm:$0xff]  }
  0x46   :  { %781 = vmatmul.mubr.bf16.vlgmr.msra.gmra.mxu0 %v1079_v32  ;;  %1244 = vmatprep.subr.bf16.mxu1 %v1363_v40  ;;  %v1514_v32 = vmov 0.0  }
  0x47   :  { %1223 = vmatpush3.bf16.msra.mxu0 %v1362_v39  ;;  %860 = vmatprep.mubr.bf16.mxu0 %v1084_v7  ;;  %v1422_v39 = vld [vmem:[#allocation7] sm:$0xff]  }
  0x48   :  { %821 = vmatmul.mubr.bf16.vlgmr.msra.gmra.mxu1 %v1081_v37  ;;  %1224 = vmatprep.subr.bf16.mxu0 %v1365_v42  ;;  %v1420_v37 = vld [vmem:[#allocation7 + $0x10] sm:$0xff]  }
  0x49   :  { %1245 = vmatpush3.bf16.msra.mxu1 %v1364_v41  ;;  %900 = vmatprep.mubr.bf16.mxu1 %v1086_v12 }
  0x4a   :  { %1246 = vmatprep.subr.bf16.mxu1 %v1367_v44 }
  0x4b   :  { %1225 = vmatpush3.bf16.msra.mxu0 %v1366_v43 }
  0x4c   :  { %1226 = vmatprep.subr.bf16.mxu0 %v1369_v46 }
  0x4d   :  { %1247 = vmatpush3.bf16.msra.mxu1 %v1368_v45 }
  0x4e   :  { %1248 = vmatprep.subr.bf16.mxu1 %v1371_v48 }
  0x4f   :  { %1227 = vmatpush3.bf16.msra.mxu0 %v1370_v47 }
  0x50   :  { %1228 = vmatprep.subr.bf16.mxu0 %v1373_v50 }
  0x51   :  { %1249 = vmatpush3.bf16.msra.mxu1 %v1372_v49 }
  0x52   :  { %1250 = vmatprep.subr.bf16.mxu1 %v1375_v52 }
  0x53   :  { %1229 = vmatpush3.bf16.msra.mxu0 %v1374_v51 }
  0x54   :  { %1230 = vmatprep.subr.bf16.mxu0 %v1377_v54 }
  0x55   :  { %1251 = vmatpush3.bf16.msra.mxu1 %v1376_v53 }
  0x56   :  { %1252 = vmatprep.subr.bf16.mxu1 %v1379_v56 }
  0x57   :  { %1231 = vmatpush3.bf16.msra.mxu0 %v1378_v55 }
  0x58   :  { %1232 = vmatprep.subr.bf16.mxu0 %v1381_v58 }
  0x59   :  { %1253 = vmatpush3.bf16.msra.mxu1 %v1380_v57  ;;  %v1078_v57 = vld [vmem:[%s1567_s2] ss:$0 sm:$0xff]  ;;  %s1516_s2 = smov [#allocation8]  }
  0x5a   :  { %1254 = vmatprep.subr.bf16.mxu1 %v1383_v60  ;;  %s1068_s11 = sshll.u32 %s1516_s2, 4  ;;  %s1069_s11 = int_to_ptr.vmem [resolvable:$true] %s1068_s11 }
  0x5b   :  { %1233 = vmatpush3.bf16.msra.mxu0 %v1382_v59  ;;  %s1483_s12 = scalar_lea.vmem %s1069_s11, 128  ;;  %p1488_p2 = scmp.lt.s32.totalorder %s1069_s11, %s1069_s11 }
  0x5c   :  { %1234 = vmatprep.subr.bf16.mxu0 %v1385_v62  ;;  %p1484_p1 = scmp.ne.s32.totalorder %s1069_s11, %s1483_s12  ;;  %p1489_p3 = scmp.lt.s32.totalorder %s1483_s12, %s1483_s12 }
  0x5d   :  { %1255 = vmatpush3.bf16.msra.mxu1 %v1384_v61 }
  0x5e   :  { %1256 = vmatprep.subr.bf16.mxu1 %v1387_v0  ;;  %p1490_p4 = por %p1489_p3, %p1488_p2 }
  0x5f   :  { %1235 = vmatpush3.bf16.msra.mxu0 %v1386_v63 }
  0x60   :  { %1236 = vmatprep.subr.bf16.mxu0 %v1389_v2  ;;  %p1491_p5 = pnand %p1490_p4, %p1484_p1 }
  0x61   :  { %1257 = vmatpush3.bf16.msra.mxu1 %v1388_v1 }
  0x62   :  { %1258 = vmatprep.subr.bf16.mxu1 %v1391_v4 }
  0x63   :  { %1237 = vmatpush3.bf16.msra.mxu0 %v1390_v3 }
  0x64   :  { %1266 = vmatprep.subr.bf16.mxu0 %v1395_v9  ;;  %v1169_v9 = vld [vmem:[%s1569_s4] ss:$0 sm:$0xff] }
  0x65   :  { %1259 = vmatpush3.bf16.msra.mxu1 %v1394_v8 }
  0x66   :  { %861 = vmatmul.mubr.bf16.vlgmr.msra.gmra.mxu0 %v1083_v6  ;;  %1297 = vmatprep.subr.bf16.mxu1 %v1514_v32 }
  0x67   :  { %1267 = vmatpush3.bf16.msra.mxu0 %v1398_v13  ;;  %940 = vmatprep.mubr.bf16.mxu0 %v1088_v24 }
  0x68   :  { %901 = vmatmul.mubr.bf16.vlgmr.msra.gmra.mxu1 %v1085_v11  ;;  %1268 = vmatprep.subr.bf16.mxu0 %v1399_v14 }
  0x69   :  { %1298 = vmatpush3.bf16.msra.mxu1 %v1415_v31  ;;  %1313 = vmatprep.mubr.msk.bf16.mxu1 %vm1515_vm0, %v1514_v32 }
  0x6a   :  { %1299 = vmatprep.subr.bf16.mxu1 %v1514_v32 }
  0x6b   :  { %1269 = vmatpush3.bf16.msra.mxu0 %v1400_v15 }
  0x6c   :  { %1270 = vmatprep.subr.bf16.mxu0 %v1401_v16 }
  0x6d   :  { %1300 = vmatpush3.bf16.msra.mxu1 %v1416_v33 }
  0x6e   :  { %1301 = vmatprep.subr.bf16.mxu1 %v1514_v32 }
  0x6f   :  { %1271 = vmatpush3.bf16.msra.mxu0 %v1402_v17 }
  0x70   :  { %1272 = vmatprep.subr.bf16.mxu0 %v1403_v18 }
  0x71   :  { %1302 = vmatpush3.bf16.msra.mxu1 %v1417_v34 }
  0x72   :  { %1303 = vmatprep.subr.bf16.mxu1 %v1514_v32 }
  0x73   :  { %1273 = vmatpush3.bf16.msra.mxu0 %v1404_v19 }
  0x74   :  { %1274 = vmatprep.subr.bf16.mxu0 %v1405_v20 }
  0x75   :  { %1304 = vmatpush3.bf16.msra.mxu1 %v1418_v35 }
  0x76   :  { %1305 = vmatprep.subr.bf16.mxu1 %v1514_v32 }
  0x77   :  { %1275 = vmatpush3.bf16.msra.mxu0 %v1406_v21 }
  0x78   :  { %1276 = vmatprep.subr.bf16.mxu0 %v1407_v22 }
  0x79   :  { %1306 = vmatpush3.bf16.msra.mxu1 %v1419_v36 }
  0x7a   :  { %1307 = vmatprep.subr.bf16.mxu1 %v1514_v32 }
  0x7b   :  { %1277 = vmatpush3.bf16.msra.mxu0 %v1408_v25 }
  0x7c   :  { %1278 = vmatprep.subr.bf16.mxu0 %v1409_v26 }
  0x7d   :  { %1308 = vmatpush3.bf16.msra.mxu1 %v1420_v37 }
  0x7e   :  { %1309 = vmatprep.subr.bf16.mxu1 %v1514_v32 }
  0x7f   :  { %1279 = vmatpush3.bf16.msra.mxu0 %v1410_v27 }
  0x80   :  { %1280 = vmatprep.subr.bf16.mxu0 %v1411_v28 }
  0x81   :  { %1310 = vmatpush3.bf16.msra.mxu1 %v1421_v38 }
  0x82   :  { %1311 = vmatprep.subr.bf16.mxu1 %v1514_v32 }
  0x83   :  { %1281 = vmatpush3.bf16.msra.mxu0 %v1412_v29 }
  0x85   :  { %1312 = vmatpush3.bf16.msra.mxu1 %v1422_v39 }
  0x86   :  { %941 = vmatmul.mubr.bf16.vlgmr.msra.gmra.mxu0 %v1087_v30 }
 0x106   :  { %v1194_v40 = vpop.f32.mrf.mxu0 }
 0x108   :  { %v1195_v41 = vpop.f32.mrf.mxu0  ;;  %v1216_v42 = vpop.f32.mrf.mxu1 }
 0x109   :  { %v1196_v56 = vadd.f32 %v1195_v41, %v1194_v40 }
 0x10a   :  { %v1197_v43 = vpop.f32.mrf.mxu0  ;;  %v1217_v44 = vpop.f32.mrf.mxu1 }
 0x10b   :  { %v783_v58 = vadd.f32 %v1196_v56, %v1078_v57  ;;  %v1218_v59 = vadd.f32 %v1217_v44, %v1216_v42 }
 0x10c   :  { %v1198_v45 = vpop.f32.mrf.mxu0  ;;  %v1219_v46 = vpop.f32.mrf.mxu1 }
 0x10d   :  { %v823_v61 = vadd.f32 %v1218_v59, %v783_v58 }
 0x10e   :  { %v1220_v47 = vpop.f32.mrf.mxu1 }
 0x126   :  { %v1238_v48 = vpop.f32.mrf.mxu0 }
 0x128   :  { %v1239_v49 = vpop.f32.mrf.mxu0  ;;  %v1260_v50 = vpop.f32.mrf.mxu1 }
 0x129   :  { %v1240_v60 = vadd.f32 %v1239_v49, %v1238_v48 }
 0x12a   :  { %v1241_v51 = vpop.f32.mrf.mxu0  ;;  %v1261_v52 = vpop.f32.mrf.mxu1 }
 0x12b   :  { %v863_v62 = vadd.f32 %v1240_v60, %v823_v61  ;;  %v1262_v63 = vadd.f32 %v1261_v52, %v1260_v50 }
 0x12c   :  { %v1242_v53 = vpop.f32.mrf.mxu0  ;;  %v1263_v54 = vpop.f32.mrf.mxu1 }
 0x12d   :  { %v903_v2 = vadd.f32 %v1262_v63, %v863_v62 }
 0x12e   :  { %v1264_v55 = vpop.f32.mrf.mxu1 }
 0x146   :  { %v1282_v0 = vpop.f32.mrf.mxu0 }
 0x148   :  { %v1283_v1 = vpop.f32.mrf.mxu0 }
 0x149   :  { %v1284_v3 = vadd.f32 %v1283_v1, %v1282_v0 }
 0x14a   :  { %v1285_v4 = vpop.f32.mrf.mxu0 }
 0x14b   :  { %v943_v5 = vadd.f32 %v1284_v3, %v903_v2 }
 0x14c   :  { %v1286_v6 = vpop.f32.mrf.mxu0 }
 0x14d   :  { %v948_v7 = vmax.f32 %v943_v5, 0.0 }
 0x14f   :  { %v949_v8 = vpack.c.bf16 %v948_v7, %v948_v7 }
 0x151   :  { %1314 = vmatmul.mubr.bf16.vlgmr.msra.gmra.mxu1 %v949_v8 }
 0x211   :  { %v1055_v10 = vpop.f32.mrf.mxu1 }
 0x212   :  { %v1056_v11 = vadd.f32 %v1169_v9, %v1055_v10 }
 0x213   :  { %v1315_v12 = vpop.f32.mrf.mxu1 }
 0x214   :  { %1061 = vst [vmem:[#allocation8] sm:$0xff] %v1056_v11 }
 0x215   :  { %v1058_v13 = vpop.f32.mrf.mxu1 }
 0x216   :  { %1494 = shalt.err (!%p1491_p5)
}
 0x217   :  { %1071 = dma.vmem_to_hbm [thread:$0]  %s1069_s11, 128, %s1570_s5, [#allocation4]   ;;  %v1316_v14 = vpop.f32.mrf.mxu1 }
 0x218   :  { %1507 = dma.done.wait [#allocation4], 128  }
 0x219   :  { %1508 = vsyncadd [#allocation4], 4294967168 }
 0x21a   :  { %1075 = vsyncpa [#allocation3], 1 }
 0x21b   :  { %1076 = vsyncpa [#allocation6], 1 }
 0x21c   :  { %1077 = vsyncpa [#allocation4], 1 }

</bundles_post_ra>
